<compile_context>
chip_gen: v7x
topology: tpu7x:2x2x1
jax: 0.10.0
libtpu: 0.0.40
codegen_flags: <defaults>
</compile_context>

<pallas_src>
import jax
import jax.numpy as jnp
from jax.experimental import pallas as pl
from jax.experimental.pallas import tpu as pltpu


def mlp_kernel(x_ref, w1_ref, b1_ref, w2_ref, b2_ref, w3_ref, b3_ref, o_ref):
    # fc1: (TB,1) @ (1,64) has K=1 -> degenerate MXU pass; do it on the VPU.
    x = x_ref[...]                                              # (TB, 1) f32
    h1 = jnp.maximum(x * w1_ref[...] + b1_ref[...], 0.0)        # (TB, 64) f32

    # fc2: the only real matmul. bf16 operands on the MXU, f32 accumulation.
    h2 = jnp.dot(h1.astype(w2_ref.dtype), w2_ref[...],
                 preferred_element_type=jnp.float32)            # (TB, 64) f32
    h2 = jnp.maximum(h2 + b2_ref[...], 0.0)

    # fc3: (TB,64) @ (64,1) has N=1 -> VPU multiply + XLU lane reduction.
    out = jnp.sum(h2 * w3_ref[...], axis=-1, keepdims=True)     # (TB, 1) f32
    o_ref[...] = (out + b3_ref[0, 0]).astype(o_ref.dtype)


def neural_network_forward(x, params, *, block_b=512):
    """relu(x@W1+b1) -> relu(.@W2+b2) -> .@W3+b3 as a batch-gridded kernel."""
    w1, b1, w2, b2, w3t, b3 = params
    B = x.shape[0]
    tb = B if B <= block_b else block_b        # sweep 256-512 for large B
    grid = (pl.cdiv(B, tb),)
    return pl.pallas_call(
        mlp_kernel,
        out_shape=jax.ShapeDtypeStruct((B, 1), jnp.float32),
        grid=grid,
        in_specs=[
            pl.BlockSpec((tb, 1), lambda i: (i, 0)),      # x       (pipelined)
            pl.BlockSpec((1, 64), lambda i: (0, 0)),      # w1      (resident)
            pl.BlockSpec((1, 64), lambda i: (0, 0)),      # b1      (resident)
            pl.BlockSpec((64, 64), lambda i: (0, 0)),     # w2 bf16 (resident)
            pl.BlockSpec((1, 64), lambda i: (0, 0)),      # b2      (resident)
            pl.BlockSpec((1, 64), lambda i: (0, 0)),      # w3t     (resident)
            pl.BlockSpec(memory_space=pltpu.SMEM),        # b3 scalar in SMEM
        ],
        out_specs=pl.BlockSpec((tb, 1), lambda i: (i, 0)),
        compiler_params=pltpu.CompilerParams(
            dimension_semantics=("parallel",)),           # megacore on v7x
    )(x, w1, b1, w2, b2, w3t, b3)


def init_params(key):
    """Deterministic init matching the PyTorch module's layer shapes.

    fc1: Linear(1, 64), fc2: Linear(64, 64), fc3: Linear(64, 1).
    Kaiming-uniform-like bound 1/sqrt(fan_in), same as torch default.
    Returned in f32, (in, out) layout.
    """
    k1, k2, k3, k4, k5, k6 = jax.random.split(key, 6)

    def uniform(k, shape, fan_in):
        bound = 1.0 / jnp.sqrt(jnp.float32(fan_in))
        return jax.random.uniform(k, shape, jnp.float32, -bound, bound)

    w1 = uniform(k1, (1, 64), 1)      # (in, out)
    b1 = uniform(k2, (1, 64), 1)
    w2 = uniform(k3, (64, 64), 64)
    b2 = uniform(k4, (1, 64), 64)
    w3 = uniform(k5, (64, 1), 64)
    b3 = uniform(k6, (1, 1), 64)
    return (w1, b1, w2, b2, w3, b3)


def prepare_params(params_f32):
    """Kernel-side parameter layout: w2 -> bf16 (MXU), w3 -> (1, 64) row."""
    w1, b1, w2, b2, w3, b3 = params_f32
    return (w1, b1, w2.astype(jnp.bfloat16), b2, w3.T, b3)


def reference_forward_f32(x, params_f32):
    """Pure-f32 reference matching the PyTorch module semantics."""
    w1, b1, w2, b2, w3, b3 = params_f32
    h1 = jnp.maximum(x @ w1 + b1, 0.0)
    h2 = jnp.maximum(h1 @ w2 + b2, 0.0)
    return h2 @ w3 + b3


def reference_forward_matched(x, params):
    """Reference with the same bf16-fc2 mixed precision as the kernel."""
    w1, b1, w2_bf16, b2, w3t, b3 = params
    h1 = jnp.maximum(x @ w1 + b1, 0.0)
    h2 = jnp.dot(h1.astype(jnp.bfloat16), w2_bf16,
                 preferred_element_type=jnp.float32)
    h2 = jnp.maximum(h2 + b2, 0.0)
    return h2 @ w3t.T + b3


if __name__ == "__main__":
    key = jax.random.PRNGKey(0)
    pkey, xkey = jax.random.split(key)
    params_f32 = init_params(pkey)
    params = prepare_params(params_f32)

    batch = 8
    x = jax.random.normal(xkey, (batch, 1), jnp.float32)

    out = jax.block_until_ready(neural_network_forward(x, params))

    ref_matched = reference_forward_matched(x, params)
    ref_f32 = reference_forward_f32(x, params_f32)

    assert out.shape == (batch, 1), out.shape
    # Tight check vs the precision-matched reference (same bf16 fc2 path).
    assert jnp.allclose(out, ref_matched, atol=1e-4, rtol=1e-4), \
        "mismatch vs precision-matched reference"
    # Loose check vs the pure-f32 PyTorch-equivalent reference (bf16 rounding).
    assert jnp.allclose(out, ref_f32, atol=5e-2, rtol=5e-2), \
        "mismatch vs f32 reference"

    print("KERNEL_OK")
</pallas_src>

<mosaic_0001>
module attributes {stable_mosaic.version = 11 : i64} {
  func.func @mlp_kernel(%arg0: i32, %arg1: memref<8x1xf32, #tpu.memory_space<vmem>>, %arg2: memref<1x64xf32, #tpu.memory_space<vmem>>, %arg3: memref<1x64xf32, #tpu.memory_space<vmem>>, %arg4: memref<64x64xbf16, #tpu.memory_space<vmem>>, %arg5: memref<1x64xf32, #tpu.memory_space<vmem>>, %arg6: memref<1x64xf32, #tpu.memory_space<vmem>>, %arg7: memref<1x1xf32, #tpu.memory_space<smem>>, %arg8: memref<8x1xf32, #tpu.memory_space<vmem>>) attributes {dimension_semantics = [#tpu.dimension_semantics<parallel>], iteration_bounds = array<i64: 1>, scalar_prefetch = 0 : i64, scratch_operands = 0 : i64, tpu.core_type = #tpu.core_type<tc>, window_params = [{transform_indices = @transform_0, window_bounds = array<i64: 8, 1>}, {pipeline_mode = #tpu.pipeline_mode<synchronous>, transform_indices = @transform_1, window_bounds = array<i64: 1, 64>}, {pipeline_mode = #tpu.pipeline_mode<synchronous>, transform_indices = @transform_2, window_bounds = array<i64: 1, 64>}, {pipeline_mode = #tpu.pipeline_mode<synchronous>, transform_indices = @transform_3, window_bounds = array<i64: 64, 64>}, {pipeline_mode = #tpu.pipeline_mode<synchronous>, transform_indices = @transform_4, window_bounds = array<i64: 1, 64>}, {pipeline_mode = #tpu.pipeline_mode<synchronous>, transform_indices = @transform_5, window_bounds = array<i64: 1, 64>}, {transform_indices = @transform_6, window_bounds = array<i64: 1, 1>}, {transform_indices = @transform_7, window_bounds = array<i64: 8, 1>}]} {
    %c0 = arith.constant 0 : index
    %c0_0 = arith.constant 0 : index
    %0 = vector.load %arg1[%c0, %c0_0] : memref<8x1xf32, #tpu.memory_space<vmem>>, vector<8x1xf32>
    %c0_1 = arith.constant 0 : index
    %c0_2 = arith.constant 0 : index
    %1 = vector.load %arg2[%c0_1, %c0_2] : memref<1x64xf32, #tpu.memory_space<vmem>>, vector<1x64xf32>
    %2 = vector.broadcast %0 : vector<8x1xf32> to vector<8x64xf32>
    %3 = vector.broadcast %1 : vector<1x64xf32> to vector<8x64xf32>
    %4 = arith.mulf %2, %3 : vector<8x64xf32>
    %c0_3 = arith.constant 0 : index
    %c0_4 = arith.constant 0 : index
    %5 = vector.load %arg3[%c0_3, %c0_4] : memref<1x64xf32, #tpu.memory_space<vmem>>, vector<1x64xf32>
    %6 = vector.broadcast %5 : vector<1x64xf32> to vector<8x64xf32>
    %7 = arith.addf %4, %6 : vector<8x64xf32>
    %cst = arith.constant 0.000000e+00 : f32
    %8 = vector.broadcast %cst : f32 to vector<8x64xf32>
    %9 = arith.maximumf %7, %8 : vector<8x64xf32>
    %10 = arith.truncf %9 : vector<8x64xf32> to vector<8x64xbf16>
    %c0_5 = arith.constant 0 : index
    %c0_6 = arith.constant 0 : index
    %11 = vector.load %arg4[%c0_5, %c0_6] : memref<64x64xbf16, #tpu.memory_space<vmem>>, vector<64x64xbf16>
    %cst_7 = arith.constant dense<0.000000e+00> : vector<8x64xf32>
    %12 = tpu.matmul %10, %11, %cst_7 {dimension_numbers = #tpu.dot_dimension_numbers<[1], [0], [0], [1], [0, 0, 1, 1], [], []>} : vector<8x64xbf16>, vector<64x64xbf16>, vector<8x64xf32> -> vector<8x64xf32>
    %c0_8 = arith.constant 0 : index
    %c0_9 = arith.constant 0 : index
    %13 = vector.load %arg5[%c0_8, %c0_9] : memref<1x64xf32, #tpu.memory_space<vmem>>, vector<1x64xf32>
    %14 = vector.broadcast %13 : vector<1x64xf32> to vector<8x64xf32>
    %15 = arith.addf %12, %14 : vector<8x64xf32>
    %cst_10 = arith.constant 0.000000e+00 : f32
    %16 = vector.broadcast %cst_10 : f32 to vector<8x64xf32>
    %17 = arith.maximumf %15, %16 : vector<8x64xf32>
    %c0_11 = arith.constant 0 : index
    %c0_12 = arith.constant 0 : index
    %18 = vector.load %arg6[%c0_11, %c0_12] : memref<1x64xf32, #tpu.memory_space<vmem>>, vector<1x64xf32>
    %19 = vector.broadcast %18 : vector<1x64xf32> to vector<8x64xf32>
    %20 = arith.mulf %17, %19 : vector<8x64xf32>
    %cst_13 = arith.constant dense<0.000000e+00> : vector<8xf32>
    %21 = vector.multi_reduction <add>, %20, %cst_13 [1] : vector<8x64xf32> to vector<8xf32>
    %22 = vector.shape_cast %21 : vector<8xf32> to vector<8x1xf32>
    %c0_14 = arith.constant 0 : index
    %c0_15 = arith.constant 0 : index
    %23 = memref.load %arg7[%c0_14, %c0_15] : memref<1x1xf32, #tpu.memory_space<smem>>
    %24 = vector.broadcast %23 : f32 to vector<8x1xf32>
    %25 = arith.addf %22, %24 : vector<8x1xf32>
    %c0_16 = arith.constant 0 : index
    %c0_17 = arith.constant 0 : index
    %26 = vector.load %arg8[%c0_16, %c0_17] : memref<8x1xf32, #tpu.memory_space<vmem>>, vector<8x1xf32>
    tpu.vector_store %arg8[%c0_16, %c0_17], %25 {strides = array<i32>} : memref<8x1xf32, #tpu.memory_space<vmem>>, vector<8x1xf32>,
    return
  }
  func.func @transform_0(%arg0: i32) -> (i32, i32) {
    %c0_i32 = arith.constant 0 : i32
    %c0_i32_0 = arith.constant 0 : i32
    return %arg0, %c0_i32 : i32, i32
  }
  func.func @transform_1(%arg0: i32) -> (i32, i32) {
    %c0_i32 = arith.constant 0 : i32
    %c0_i32_0 = arith.constant 0 : i32
    %c0_i32_1 = arith.constant 0 : i32
    return %c0_i32, %c0_i32_0 : i32, i32
  }
  func.func @transform_2(%arg0: i32) -> (i32, i32) {
    %c0_i32 = arith.constant 0 : i32
    %c0_i32_0 = arith.constant 0 : i32
    %c0_i32_1 = arith.constant 0 : i32
    return %c0_i32, %c0_i32_0 : i32, i32
  }
  func.func @transform_3(%arg0: i32) -> (i32, i32) {
    %c0_i32 = arith.constant 0 : i32
    %c0_i32_0 = arith.constant 0 : i32
    %c0_i32_1 = arith.constant 0 : i32
    return %c0_i32, %c0_i32_0 : i32, i32
  }
  func.func @transform_4(%arg0: i32) -> (i32, i32) {
    %c0_i32 = arith.constant 0 : i32
    %c0_i32_0 = arith.constant 0 : i32
    %c0_i32_1 = arith.constant 0 : i32
    return %c0_i32, %c0_i32_0 : i32, i32
  }
  func.func @transform_5(%arg0: i32) -> (i32, i32) {
    %c0_i32 = arith.constant 0 : i32
    %c0_i32_0 = arith.constant 0 : i32
    %c0_i32_1 = arith.constant 0 : i32
    return %c0_i32, %c0_i32_0 : i32, i32
  }
  func.func @transform_6(%arg0: i32) -> (i32, i32) {
    %c0_i32 = arith.constant 0 : i32
    %c0_i32_0 = arith.constant 0 : i32
    %c0_i32_1 = arith.constant 0 : i32
    return %c0_i32, %c0_i32_0 : i32, i32
  }
  func.func @transform_7(%arg0: i32) -> (i32, i32) {
    %c0_i32 = arith.constant 0 : i32
    %c0_i32_0 = arith.constant 0 : i32
    return %arg0, %c0_i32 : i32, i32
  }
}

</mosaic_0001>

<bundles_post_ra>
// kernel: tpu_custom_call.1
= control target key start
LH: loop header
LB: loop body
LE: loop exit
PB: predicated region body
PF: predicated region fallthrough
CT: control target
= control target key end

     0   :  { %13 = vsyncpa [#allocation4], 0  ;;  %s232_s24 = smov [#allocation3]   ;;  %s311_s0 = inlined_call_operand.vmem [shape: f32[8,1], index: 0, kind: input, shape index: {}]   ;;  %s312_s1 = inlined_call_operand.vmem [shape: f32[1,64], index: 1, kind: input, shape index: {}]   ;;  %s313_s2 = inlined_call_operand.vmem [shape: f32[1,64], index: 2, kind: input, shape index: {}]   ;;  %s314_s3 = inlined_call_operand.hbm [shape: bf16[64,64], index: 3, kind: input, shape index: {}]   ;;  %s315_s4 = inlined_call_operand.vmem [shape: f32[1,64], index: 4, kind: input, shape index: {}]   ;;  %s316_s5 = inlined_call_operand.vmem [shape: f32[1,64], index: 5, kind: input, shape index: {}]   ;;  %s317_s6 = inlined_call_operand.<no memory space> [shape: f32[1,1], index: 6, kind: input, shape index: {}]   ;;  %s318_s7 = inlined_call_operand.vmem [shape: f32[8,1], index: 7, kind: output, shape index: {}]  }
   0x1   :  { %s25_s25 = sshll.u32 %s232_s24, 4  ;;  %s208_s28 = scalar_lea.hbm %s314_s3, 512  ;;  %s26_s25 = int_to_ptr.vmem [resolvable:$true] %s25_s25 }
   0x2   :  { %p209_p0 = scmp.ne.s32.totalorder %s314_s3, %s208_s28  ;;  %p212_p1 = scmp.lt.u32.totalorder %s208_s28, %s314_s3 }
   0x4   :  { %p214_p2 = pnand %p212_p1, %p209_p0 }
   0x6   :  { %217 = shalt.err (!%p214_p2)
}
   0x7   :  { %s218_s10 = scalar_lea.vmem %s26_s25, 512  ;;  %p223_p4 = scmp.lt.s32.totalorder %s26_s25, %s26_s25 }
   0x8   :  { %p219_p3 = scmp.ne.s32.totalorder %s26_s25, %s218_s10  ;;  %p224_p5 = scmp.lt.s32.totalorder %s218_s10, %s218_s10 }
   0xa   :  { %p225_p6 = por %p224_p5, %p223_p4 }
   0xc   :  { %p226_p7 = pnand %p225_p6, %p219_p3 }
   0xe   :  { %229 = shalt.err (!%p226_p7)
}
   0xf   :  { %s233_s11 = smov 64   ;;  %s234_s12 = smov 4  }
  0x10   :  { %31 = dma.hbm_to_vmem [thread:$0]  %s314_s3, 512, %s26_s25, [#allocation4], %s233_s11, %s233_s11, %s234_s12  }
  0x11   :  { %230 = dma.done.wait [#allocation4], 512  }
  0x12   :  { %231 = vsyncadd [#allocation4], 4294966784  ;;  %v235_v0 = vmov 0   ;;  %v236_v1 = vmov 0.0   ;;  %v42_v2 = vld [vmem:[%s311_s0] sm:$0xff]  ;;  %v205_v4 = vld [vmem:[#allocation3 + $0x8] sm:$0xff]   ;;  %v162_v24 = vstv %s317_s6 }
  0x13   :  { %203 = vset.pattern.permute.xlu0 %v235_v0  ;;  %185 = vmatprep.subr.bf16.mxu0 %v236_v1  ;;  %v204_v3 = vld [vmem:[#allocation3] sm:$0xff]   ;;  %v206_v5 = vld [vmem:[#allocation3 + $0x10] sm:$0xff]   ;;  %vm237_vm0 = vmmov 0   ;;  %v207_v6 = vld [vmem:[#allocation3 + $0x18] sm:$0xff]   ;;  %vm105_vm1 = vcmask 523264   ;;  %vm164_vm2 = vcmask 7168  }
  0x14   :  { %46 = vperm.xlu0 %203, %v42_v2   ;;  %186 = vmatpush3.bf16.msra.mxu0 %v204_v3  ;;  %v171_v7 = vld [vmem:[%s312_s1] ss:$0 sm:$0xff] }
  0x15   :  { %187 = vmatprep.subr.bf16.mxu0 %v236_v1  ;;  %193 = vmatprep.mubr.msk.bf16.mxu0 %vm237_vm0, %v236_v1  ;;  %v172_v8 = vld [vmem:[%s313_s2] ss:$0 sm:$0xff] }
  0x16   :  { %v173_v14 = vld [vmem:[%s315_s4] ss:$0 sm:$0xff] }
  0x17   :  { %v179_v19 = vld [vmem:[%s316_s5] ss:$0 sm:$0xff] }
  0x18   :  { %188 = vmatpush3.bf16.msra.mxu0 %v205_v4 }
  0x19   :  { %189 = vmatprep.subr.bf16.mxu0 %v236_v1 }
  0x1c   :  { %190 = vmatpush3.bf16.msra.mxu0 %v206_v5 }
  0x1d   :  { %191 = vmatprep.subr.bf16.mxu0 %v236_v1 }
  0x20   :  { %192 = vmatpush3.bf16.msra.mxu0 %v207_v6 }
  0x93   :  { %v47_v9 = vpop.permute.xlu0 %46 }
  0x94   :  { %v55_v10 = vmul.f32 %v171_v7, %v47_v9 }
  0x96   :  { %v63_v11 = vadd.f32 %v172_v8, %v55_v10 }
  0x98   :  { %v64_v12 = vmax.f32 %v63_v11, 0.0 }
  0x9a   :  { %v65_v13 = vpack.c.bf16 %v64_v12, %v64_v12 }
  0x9c   :  { %194 = vmatmul.mubr.msk.bf16.vlgmr.msra.gmra.mrb[0].mxu0 %vm105_vm1, %v65_v13 }
 0x16f   :  { %v143_v15 = vpop.f32.mrb[0].mxu0 }
 0x170   :  { %v144_v16 = vadd.f32 %v173_v14, %v143_v15  ;;  %v195_v17 = vpop.f32.mrb[1].mxu0 }
 0x171   :  { %v146_v18 = vpop.f32.mrb[2].mxu0 }
 0x172   :  { %v149_v20 = vmax.f32 %v144_v16, 0.0  ;;  %v196_v21 = vpop.f32.mrb[3].mxu0 }
 0x174   :  { %v157_v22 = vmul.f32 %v179_v19, %v149_v20 }
 0x176   :  { %v158_v23 = vsel %vm105_vm1, %v157_v22, 0.0 }
 0x177   :  { %159 = vadd.xlane.f32.xlu0 %v158_v23 }
 0x204   :  { %v160_v25 = vpop.xlane.xlu0 %159 }
 0x205   :  { %v163_v26 = vadd.f32 %v162_v24, %v160_v25 }
 0x207   :  { %165 = vst.msk [vmem:[%s318_s7] sm:$0xff] %vm164_vm2, %v163_v26 }
 0x208   :  { %170 = vsyncpa [#allocation4], 1 }

</bundles_post_ra>
